<compile_context>
chip_gen: v7x
topology: tpu7x:2x2x1
jax: 0.10.0
libtpu: 0.0.40
codegen_flags: <defaults>
</compile_context>

<pallas_src>
import jax
import jax.numpy as jnp
from jax.experimental import pallas as pl
from jax.experimental.pallas import tpu as pltpu

NUM_KEEP = 12  # forward(): x[:, :12, :]


def _make_slice_kernel(tb, rem, num_keep):
    """One strided HBM->VMEM DMA per grid step, straight into the output block."""

    def _dma(x_hbm, o_view, sem, start, nrows):
        cp = pltpu.make_async_copy(
            x_hbm.at[pl.ds(start, nrows), pl.ds(0, num_keep), :],
            o_view,
            sem,
        )
        cp.start()
        cp.wait()

    def kernel(x_hbm, o_ref, sem):
        i = pl.program_id(0)
        start = i * tb
        if rem == 0:
            _dma(x_hbm, o_ref, sem, start, tb)
        else:
            last = pl.num_programs(0) - 1

            @pl.when(i != last)
            def _():
                _dma(x_hbm, o_ref, sem, start, tb)

            @pl.when(i == last)
            def _():
                # Static-size tail DMA; rows beyond `rem` in the VMEM block are
                # never written back (Pallas clips the OOB part of the block).
                _dma(x_hbm, o_ref.at[pl.ds(0, rem)], sem, start, rem)

    return kernel


def custom_model_forward(x):
    """Pallas implementation of CustomModel.forward: returns x[:, :12, :]."""
    B, F, D = x.shape
    assert F >= NUM_KEEP, "num_fields must be >= 12"

    # Identity fast path: the slice is a no-op, skip the kernel entirely.
    if F == NUM_KEEP:
        return x

    # NOTE: PyTorch docstring says Long tensor; with JAX defaults this is int32.
    # (If x64 is enabled the kernel still works but moves 2x the bytes.)
    itemsize = jnp.dtype(x.dtype).itemsize
    keep_elems = NUM_KEEP * D

    # dtype-aware sublane rounding (sub-32-bit dtypes pack along sublanes).
    pack = max(1, 4 // itemsize)
    sub_mult = 8 * pack

    # ~4 MiB of output per grid step; only the output is VMEM-resident
    # (double-buffered), the input stays in HBM and is DMA'd manually.
    target_tile_bytes = 4 * 1024 * 1024
    row_bytes = keep_elems * itemsize
    target_rows = max(1, target_tile_bytes // max(row_bytes, 1))

    if B <= sub_mult:
        tb = B
    else:
        tb = min(target_rows, B)
        tb = max(sub_mult, (tb // sub_mult) * sub_mult)
        if B >= 2 * sub_mult:
            # Guarantee >= 2 grid blocks so both v7x TensorCores get work.
            half = max(sub_mult, (((B + 1) // 2) // sub_mult) * sub_mult)
            tb = min(tb, half)

    grid = (pl.cdiv(B, tb),)
    rem = B % tb

    out_shape = jax.ShapeDtypeStruct((B, NUM_KEEP, D), x.dtype)

    tile_out_bytes = tb * keep_elems * itemsize
    vmem_limit = int(min(max(4 * 1024 * 1024, 4 * tile_out_bytes),
                         32 * 1024 * 1024))

    # Pure copy: no flops; bytes = read kept slice + write kept slice.
    cost = pl.CostEstimate(
        flops=0,
        transcendentals=0,
        bytes_accessed=2 * B * keep_elems * itemsize,
    )

    return pl.pallas_call(
        _make_slice_kernel(tb, rem, NUM_KEEP),
        out_shape=out_shape,
        grid_spec=pltpu.PrefetchScalarGridSpec(
            num_scalar_prefetch=0,
            grid=grid,
            in_specs=[pl.BlockSpec(memory_space=pl.ANY)],  # raw HBM ref, no auto-DMA
            out_specs=pl.BlockSpec((tb, NUM_KEEP, D), lambda i: (i, 0, 0)),
            scratch_shapes=[pltpu.SemaphoreType.DMA],
        ),
        compiler_params=pltpu.CompilerParams(
            dimension_semantics=("parallel",),
            vmem_limit_bytes=vmem_limit,
        ),
        cost_estimate=cost,
    )(x)


if __name__ == "__main__":
    key = jax.random.PRNGKey(0)

    # Canonical small shape: (batch, num_fields, embed_dim)
    B, F, D = 2, 16, 128
    x = jax.random.randint(key, (B, F, D), minval=0, maxval=1000, dtype=jnp.int32)
    out = jax.block_until_ready(custom_model_forward(x))
    ref = x[:, :NUM_KEEP, :]
    assert out.shape == (B, NUM_KEEP, D)
    assert out.dtype == x.dtype
    assert bool(jnp.all(out == ref))

    # Second shape exercising the multi-block grid + ragged-tail path
    # (typical torchfm-ish shape: 39 fields, embed 16, odd batch).
    B2, F2, D2 = 37, 39, 16
    x2 = jax.random.randint(jax.random.PRNGKey(1), (B2, F2, D2),
                            minval=0, maxval=1000, dtype=jnp.int32)
    out2 = jax.block_until_ready(custom_model_forward(x2))
    assert out2.shape == (B2, NUM_KEEP, D2)
    assert bool(jnp.all(out2 == x2[:, :NUM_KEEP, :]))

    print("KERNEL_OK")
</pallas_src>

<mosaic_0001>
module attributes {stable_mosaic.version = 11 : i64} {
  func.func @kernel(%arg0: i32, %arg1: memref<2x16x128xi32, #tpu.memory_space<any>>, %arg2: memref<2x12x128xi32, #tpu.memory_space<vmem>>, %arg3: memref<!tpu.dma_semaphore, #tpu.memory_space<semaphore_mem>>) attributes {dimension_semantics = [#tpu.dimension_semantics<parallel>], iteration_bounds = array<i64: 1>, scalar_prefetch = 0 : i64, scratch_operands = 1 : i64, tpu.core_type = #tpu.core_type<tc>, window_params = [{}, {transform_indices = @transform_1, window_bounds = array<i64: 2, 12, 128>}]} {
    %c2_i32 = arith.constant 2 : i32
    %0 = arith.muli %arg0, %c2_i32 : i32
    %c0_i32 = arith.constant 0 : i32
    %c0_i32_0 = arith.constant 0 : i32
    %1 = tpu.memref_slice %arg1[%0, %c0_i32, %c0_i32_0] : memref<2x16x128xi32, #tpu.memory_space<any>> -> memref<2x12x128xi32, #tpu.memory_space<any>>
    tpu.enqueue_dma source(%1 : memref<2x12x128xi32, #tpu.memory_space<any>>) target(%arg2 : memref<2x12x128xi32, #tpu.memory_space<vmem>>) target_semaphore(%arg3 : memref<!tpu.dma_semaphore, #tpu.memory_space<semaphore_mem>>)
    %c0_i32_1 = arith.constant 0 : i32
    %c0_i32_2 = arith.constant 0 : i32
    %2 = tpu.memref_slice %arg1[%0, %c0_i32_1, %c0_i32_2] : memref<2x16x128xi32, #tpu.memory_space<any>> -> memref<2x12x128xi32, #tpu.memory_space<any>>
    tpu.wait_dma2 semaphore(%arg3 : memref<!tpu.dma_semaphore, #tpu.memory_space<semaphore_mem>>) src(%2 : memref<2x12x128xi32, #tpu.memory_space<any>>) dst(%arg2 : memref<2x12x128xi32, #tpu.memory_space<vmem>>)
    return
  }
  func.func @transform_1(%arg0: i32) -> (i32, i32, i32) {
    %c0_i32 = arith.constant 0 : i32
    %c0_i32_0 = arith.constant 0 : i32
    %c0_i32_1 = arith.constant 0 : i32
    return %arg0, %c0_i32, %c0_i32_0 : i32, i32, i32
  }
}

</mosaic_0001>

<bundles_post_ra>
// kernel: tpu_custom_call.1
= control target key start
LH: loop header
LB: loop body
LE: loop exit
PB: predicated region body
PF: predicated region fallthrough
CT: control target
= control target key end

     0   :  { %s86_s0 = inlined_call_operand.hbm [shape: s32[2,16,128], index: 0, kind: input, shape index: {}]   ;;  %s87_s1 = inlined_call_operand.vmem [shape: s32[2,12,128], index: 1, kind: output, shape index: {}]  }
   0x1   :  { %s11_s8 = sshll.u32 %s87_s1, 4  ;;  %s32_s11 = scalar_lea.hbm %s86_s0, 384  ;;  %s12_s8 = int_to_ptr.vmem [resolvable:$true] %s11_s8 }
   0x2   :  { %p33_p0 = scmp.ne.s32.totalorder %s86_s0, %s32_s11  ;;  %s34_s16 = scalar_lea.hbm %s86_s0, 512 }
   0x3   :  { %p35_p1 = scmp.lt.u32.totalorder %s34_s16, %s32_s11  ;;  %p36_p2 = scmp.lt.u32.totalorder %s32_s11, %s86_s0 }
   0x5   :  { %p37_p3 = por %p36_p2, %p35_p1 }
   0x7   :  { %p38_p4 = pnand %p37_p3, %p33_p0 }
   0x9   :  { %41 = shalt.err (!%p38_p4)  }
   0xa   :  { %s42_s1 = scalar_lea.vmem %s12_s8, 384  ;;  %s46_s19 = scalar_lea.vmem %s12_s8, 512 }
   0xb   :  { %p43_p5 = scmp.ne.s32.totalorder %s12_s8, %s42_s1  ;;  %p47_p6 = scmp.lt.s32.totalorder %s12_s8, %s12_s8 }
   0xc   :  { %p48_p7 = scmp.lt.s32.totalorder %s46_s19, %s42_s1 }
   0xe   :  { %p49_p8 = por %p48_p7, %p47_p6 }
  0x10   :  { %p50_p9 = pnand %p49_p8, %p43_p5 }
  0x12   :  { %53 = shalt.err (!%p50_p9)  }
  0x13   :  { %s56_s20 = smov 256   ;;  %s57_s21 = smov 12  }
  0x14   :  { %14 = dma.hbm_to_vmem [thread:$0]  %s86_s0, 384, %s12_s8, [#allocation2], %s56_s20, %s56_s20, %s57_s21 }
  0x15   :  { %54 = dma.done.wait [#allocation2], 384 }
  0x16   :  { %55 = vsyncadd [#allocation2], 4294966912 }
  0x17   :  { %23 = vsyncmov [#allocation2] }
  0x1a   :  { %s24_s24 = vpop.sfrf %23 }
  0x1b   :  { %p29_p10 = scmp.ne.s32.totalorder %s24_s24, 0 }
  0x1d   :  { %28 = shalt.err (%p29_p10)  }

</bundles_post_ra>
